<compile_context>
chip_gen: v6e
topology: v6e:2x2x1
jax: 0.10.0
libtpu: 0.0.40
codegen_flags: <defaults>
</compile_context>

<pallas_src>
import math

import jax
import jax.numpy as jnp
from jax.experimental import pallas as pl
from jax.experimental.pallas import tpu as pltpu

EMBEDDING_DIM = 100
MAX_LEN = 60


def make_positional_encoding(embedding_dim: int = EMBEDDING_DIM,
                             max_len: int = MAX_LEN) -> jnp.ndarray:
    """Deterministic buffer init, identical to the PyTorch __init__ (even D)."""
    position = jnp.arange(0, max_len, dtype=jnp.float32)[:, None]           # (L, 1)
    div_term = jnp.exp(
        jnp.arange(0, embedding_dim, 2, dtype=jnp.float32)
        * (-math.log(10000.0) / embedding_dim)
    )                                                                        # (D/2,)
    pe = jnp.zeros((max_len, embedding_dim), dtype=jnp.float32)
    pe = pe.at[:, 0::2].set(jnp.sin(position * div_term))
    pe = pe.at[:, 1::2].set(jnp.cos(position * div_term))
    return pe                                                                # (L, D)


def _add_pe_kernel(x_ref, pe_ref, o_ref):
    # x_ref / o_ref: (Bt, S, D) block;  pe_ref: (S, D), resident across steps.
    # (Bt, S, D) + (S, D) broadcasts over the leading (batch) axis on the VPU.
    o_ref[...] = x_ref[...] + pe_ref[...]


def _choose_batch_tile(B: int, S: int, D: int, itemsize: int,
                       vmem_budget_bytes: int = 24 << 20) -> int:
    """Largest batch tile whose double-buffered in+out blocks fit the budget.

    Per grid step Pallas double-buffers the x block and the out block:
    ~ 4 * Bt * S * D * itemsize bytes (pe is resident once and negligible).
    24 MiB keeps us inside the 32 MiB scoped-VMEM default on all generations.
    """
    per_batch_row = 4 * S * D * itemsize
    bt = max(1, vmem_budget_bytes // per_batch_row)
    return int(min(B, bt))


def positional_encoding_forward(x: jnp.ndarray, pe: jnp.ndarray) -> jnp.ndarray:
    """x: (B, S, D), pe: (S, D)  ->  (B, S, D), out = x + pe (broadcast over B)."""
    B, S, D = x.shape
    assert pe.shape == (S, D), (pe.shape, (S, D))
    pe = pe.astype(x.dtype)

    bt = _choose_batch_tile(B, S, D, jnp.dtype(x.dtype).itemsize)
    num_tiles = pl.cdiv(B, bt)
    # Single block -> nothing to shard across cores; tiled batch -> parallel.
    semantics = ("arbitrary",) if num_tiles == 1 else ("parallel",)

    return pl.pallas_call(
        _add_pe_kernel,
        out_shape=jax.ShapeDtypeStruct((B, S, D), x.dtype),
        grid=(num_tiles,),
        in_specs=[
            # Large batch tile per grid step; last two dims are the full
            # (S, D) extents, satisfying the (8, 128) rule for S=60, D=100.
            pl.BlockSpec((bt, S, D), lambda b: (b, 0, 0)),
            # pe: constant index_map -> fetched once, reused every step.
            pl.BlockSpec((S, D), lambda b: (0, 0)),
        ],
        out_specs=pl.BlockSpec((bt, S, D), lambda b: (b, 0, 0)),
        compiler_params=pltpu.CompilerParams(
            dimension_semantics=semantics,
        ),
    )(x, pe)


if __name__ == "__main__":
    key = jax.random.PRNGKey(0)
    B, S, D = 2, MAX_LEN, EMBEDDING_DIM          # x must broadcast against pe (60, 100)
    x = jax.random.normal(key, (B, S, D), dtype=jnp.float32)

    pe = make_positional_encoding(D, S)

    out = positional_encoding_forward(x, pe)
    out = jax.block_until_ready(out)

    # Cross-check against the plain-JAX reference (same math as PyTorch forward).
    ref = x + pe[None, :, :]
    assert out.shape == (B, S, D)
    assert jnp.allclose(out, ref, atol=1e-6, rtol=1e-6)

    print("KERNEL_OK")
</pallas_src>

<mosaic_0001>
module attributes {stable_mosaic.version = 11 : i64} {
  func.func @_add_pe_kernel(%arg0: i32, %arg1: memref<2x60x100xf32, #tpu.memory_space<vmem>>, %arg2: memref<60x100xf32, #tpu.memory_space<vmem>>, %arg3: memref<2x60x100xf32, #tpu.memory_space<vmem>>) attributes {dimension_semantics = [#tpu.dimension_semantics<arbitrary>], iteration_bounds = array<i64: 1>, scalar_prefetch = 0 : i64, scratch_operands = 0 : i64, tpu.core_type = #tpu.core_type<tc>, window_params = [{transform_indices = @transform_0, window_bounds = array<i64: 2, 60, 100>}, {pipeline_mode = #tpu.pipeline_mode<synchronous>, transform_indices = @transform_1, window_bounds = array<i64: 60, 100>}, {transform_indices = @transform_2, window_bounds = array<i64: 2, 60, 100>}]} {
    %c0 = arith.constant 0 : index
    %c0_0 = arith.constant 0 : index
    %c0_1 = arith.constant 0 : index
    %0 = vector.load %arg1[%c0, %c0_0, %c0_1] : memref<2x60x100xf32, #tpu.memory_space<vmem>>, vector<2x60x100xf32>
    %c0_2 = arith.constant 0 : index
    %c0_3 = arith.constant 0 : index
    %1 = vector.load %arg2[%c0_2, %c0_3] : memref<60x100xf32, #tpu.memory_space<vmem>>, vector<60x100xf32>
    %2 = vector.shape_cast %1 : vector<60x100xf32> to vector<1x60x100xf32>
    %3 = vector.broadcast %2 : vector<1x60x100xf32> to vector<2x60x100xf32>
    %4 = arith.addf %0, %3 : vector<2x60x100xf32>
    %c0_4 = arith.constant 0 : index
    %c0_5 = arith.constant 0 : index
    %c0_6 = arith.constant 0 : index
    %5 = vector.load %arg3[%c0_4, %c0_5, %c0_6] : memref<2x60x100xf32, #tpu.memory_space<vmem>>, vector<2x60x100xf32>
    tpu.vector_store %arg3[%c0_4, %c0_5, %c0_6], %4 {strides = array<i32>} : memref<2x60x100xf32, #tpu.memory_space<vmem>>, vector<2x60x100xf32>,
    return
  }
  func.func @transform_0(%arg0: i32) -> (i32, i32, i32) {
    %c0_i32 = arith.constant 0 : i32
    %c0_i32_0 = arith.constant 0 : i32
    %c0_i32_1 = arith.constant 0 : i32
    return %arg0, %c0_i32, %c0_i32_0 : i32, i32, i32
  }
  func.func @transform_1(%arg0: i32) -> (i32, i32) {
    %c0_i32 = arith.constant 0 : i32
    %c0_i32_0 = arith.constant 0 : i32
    %c0_i32_1 = arith.constant 0 : i32
    return %c0_i32, %c0_i32_0 : i32, i32
  }
  func.func @transform_2(%arg0: i32) -> (i32, i32, i32) {
    %c0_i32 = arith.constant 0 : i32
    %c0_i32_0 = arith.constant 0 : i32
    %c0_i32_1 = arith.constant 0 : i32
    return %arg0, %c0_i32, %c0_i32_0 : i32, i32, i32
  }
}

</mosaic_0001>

<bundles_post_ra>
// kernel: tpu_custom_call.1
= control target key start
LH: loop header
LB: loop body
LE: loop exit
PB: predicated region body
PF: predicated region fallthrough
CT: control target
= control target key end

     0   :  { %vm51_vm0 = vcmask 818176   ;;  %vm59_vm1 = vcmask 814080   ;;  %s224_s0 = inlined_call_operand.vmem [shape: f32[2,60,100], index: 0, kind: input, shape index: {}]   ;;  %s225_s1 = inlined_call_operand.vmem [shape: f32[60,100], index: 1, kind: input, shape index: {}]   ;;  %s226_s2 = inlined_call_operand.vmem [shape: f32[2,60,100], index: 2, kind: output, shape index: {}]  }
   0x1   :  { %v11_v0 = vld [vmem:[%s224_s0] sm:$0xff]  ;;  %v12_v2 = vld [vmem:[%s224_s0 + $0x8] sm:$0xff]  ;;  %v13_v5 = vld [vmem:[%s224_s0 + $0x10] sm:$0xff] }
   0x2   :  { %v27_v1 = vld [vmem:[%s225_s1] sm:$0xff]  ;;  %v28_v4 = vld [vmem:[%s225_s1 + $0x8] sm:$0xff]  ;;  %v29_v6 = vld [vmem:[%s225_s1 + $0x10] sm:$0xff] }
   0x3   :  { %v35_v3 = vadd.f32 %v27_v1, %v11_v0  ;;  %v36_v7 = vadd.f32 %v28_v4, %v12_v2  ;;  %v37_v8 = vadd.f32 %v29_v6, %v13_v5  ;;  %v14_v9 = vld [vmem:[%s224_s0 + $0x18] sm:$0xff]  ;;  %v15_v11 = vld [vmem:[%s224_s0 + $0x20] sm:$0xff]  ;;  %v16_v14 = vld [vmem:[%s224_s0 + $0x28] sm:$0xff] }
   0x4   :  { %v30_v10 = vld [vmem:[%s225_s1 + $0x18] sm:$0xff]  ;;  %v31_v13 = vld [vmem:[%s225_s1 + $0x20] sm:$0xff]  ;;  %v32_v15 = vld [vmem:[%s225_s1 + $0x28] sm:$0xff] }
   0x5   :  { %52 = vst.msk [vmem:[%s226_s2] sm:$0xff] %vm51_vm0, %v35_v3  ;;  %v38_v12 = vadd.f32 %v30_v10, %v14_v9  ;;  %53 = vst.msk [vmem:[%s226_s2 + $0x8] sm:$0xff] %vm51_vm0, %v36_v7  ;;  %v39_v16 = vadd.f32 %v31_v13, %v15_v11  ;;  %v40_v17 = vadd.f32 %v32_v15, %v16_v14  ;;  %v17_v18 = vld [vmem:[%s224_s0 + $0x30] sm:$0xff]  ;;  %v18_v20 = vld [vmem:[%s224_s0 + $0x38] sm:$0xf] }
   0x6   :  { %54 = vst.msk [vmem:[%s226_s2 + $0x10] sm:$0xff] %vm51_vm0, %v37_v8  ;;  %v33_v19 = vld [vmem:[%s225_s1 + $0x30] sm:$0xff]  ;;  %v34_v22 = vld [vmem:[%s225_s1 + $0x38] sm:$0xf]  ;;  %v19_v23 = vld [vmem:[%s224_s0 + $0x40] sm:$0xff] }
   0x7   :  { %55 = vst.msk [vmem:[%s226_s2 + $0x18] sm:$0xff] %vm51_vm0, %v38_v12  ;;  %v41_v21 = vadd.f32 %v33_v19, %v17_v18  ;;  %v20_v24 = vld [vmem:[%s224_s0 + $0x48] sm:$0xff]  ;;  %56 = vst.msk [vmem:[%s226_s2 + $0x20] sm:$0xff] %vm51_vm0, %v39_v16  ;;  %v42_v25 = vadd.f32 %v34_v22, %v18_v20  ;;  %v43_v26 = vadd.f32 %v27_v1, %v19_v23  ;;  %v21_v28 = vld [vmem:[%s224_s0 + $0x50] sm:$0xff] }
   0x8   :  { %57 = vst.msk [vmem:[%s226_s2 + $0x28] sm:$0xff] %vm51_vm0, %v40_v17  ;;  %v44_v27 = vadd.f32 %v28_v4, %v20_v24  ;;  %v22_v29 = vld [vmem:[%s224_s0 + $0x58] sm:$0xff]  ;;  %v23_v30 = vld [vmem:[%s224_s0 + $0x60] sm:$0xff]  ;;  %v45_v31 = vadd.f32 %v29_v6, %v21_v28  ;;  %v24_v34 = vld [vmem:[%s224_s0 + $0x68] sm:$0xff] }
   0x9   :  { %58 = vst.msk [vmem:[%s226_s2 + $0x30] sm:$0xff] %vm51_vm0, %v41_v21  ;;  %v46_v32 = vadd.f32 %v30_v10, %v22_v29  ;;  %v47_v33 = vadd.f32 %v31_v13, %v23_v30  ;;  %v25_v35 = vld [vmem:[%s224_s0 + $0x70] sm:$0xff]  ;;  %v26_v36 = vld [vmem:[%s224_s0 + $0x78] sm:$0xf]  ;;  %61 = vst.msk [vmem:[%s226_s2 + $0x40] sm:$0xff] %vm51_vm0, %v43_v26  ;;  %v48_v37 = vadd.f32 %v32_v15, %v24_v34 }
   0xa   :  { %60 = vst.msk [vmem:[%s226_s2 + $0x38] sm:$0xf] %vm59_vm1, %v42_v25  ;;  %v49_v38 = vadd.f32 %v33_v19, %v25_v35  ;;  %v50_v39 = vadd.f32 %v34_v22, %v26_v36 }
   0xb   :  { %62 = vst.msk [vmem:[%s226_s2 + $0x48] sm:$0xff] %vm51_vm0, %v44_v27  ;;  %63 = vst.msk [vmem:[%s226_s2 + $0x50] sm:$0xff] %vm51_vm0, %v45_v31 }
   0xc   :  { %64 = vst.msk [vmem:[%s226_s2 + $0x58] sm:$0xff] %vm51_vm0, %v46_v32  ;;  %65 = vst.msk [vmem:[%s226_s2 + $0x60] sm:$0xff] %vm51_vm0, %v47_v33 }
   0xd   :  { %66 = vst.msk [vmem:[%s226_s2 + $0x68] sm:$0xff] %vm51_vm0, %v48_v37  ;;  %67 = vst.msk [vmem:[%s226_s2 + $0x70] sm:$0xff] %vm51_vm0, %v49_v38 }
   0xe   :  { %68 = vst.msk [vmem:[%s226_s2 + $0x78] sm:$0xf] %vm59_vm1, %v50_v39 }

</bundles_post_ra>
